<compile_context>
chip_gen: v5e
topology: v5e:2x2
jax: 0.10.0
libtpu: 0.0.40
codegen_flags: <defaults>
</compile_context>

<pallas_src>
import functools
import math

import numpy as np

import jax
import jax.numpy as jnp
from jax.experimental import pallas as pl
from jax.experimental.pallas import tpu as pltpu

LANE = 128
MAX_ROW_TILE = 512
_VMEM_LIMIT = 32 * 1024 * 1024   # stay well under v7x's 64 MiB physical VMEM

PARAMS_ROWS = pltpu.CompilerParams(
    dimension_semantics=("parallel",), vmem_limit_bytes=_VMEM_LIMIT)
PARAMS_SEQ = pltpu.CompilerParams(
    dimension_semantics=("arbitrary",), vmem_limit_bytes=_VMEM_LIMIT)


def _round_up(x, m):
    return ((x + m - 1) // m) * m


def _row_tile(n):
    return min(MAX_ROW_TILE, _round_up(max(n, 1), 8))


def _pad_axis(x, n_target, axis=0):
    if x.shape[axis] == n_target:
        return x
    pad = [(0, 0)] * x.ndim
    pad[axis] = (0, n_target - x.shape[axis])
    return jnp.pad(x, pad)


# ----------------------------- Pallas kernels ------------------------------

def _linear_kernel(*refs, relu, has_bias):
    if has_bias:
        x_ref, w_ref, b_ref, o_ref = refs
    else:
        x_ref, w_ref, o_ref = refs
        b_ref = None
    y = jnp.dot(x_ref[...], w_ref[...], preferred_element_type=jnp.float32)
    if has_bias:
        y = y + b_ref[...]
    if relu:
        y = jnp.maximum(y, 0.0)
    o_ref[...] = y


def linear(x, w, b=None, *, relu=False):
    """Row-tiled (MXU) linear: x (N,K) @ w (K,M) [+ b (1,M)] [-> relu]."""
    n, k = x.shape
    m = w.shape[1]
    rt = _row_tile(n)
    n_p = _round_up(n, rt)
    x_p = _pad_axis(x, n_p)
    in_specs = [pl.BlockSpec((rt, k), lambda i: (i, 0)),
                pl.BlockSpec((k, m), lambda i: (0, 0))]
    args = [x_p, w]
    if b is not None:
        in_specs.append(pl.BlockSpec((1, m), lambda i: (0, 0)))
        args.append(b)
    out = pl.pallas_call(
        functools.partial(_linear_kernel, relu=relu, has_bias=b is not None),
        out_shape=jax.ShapeDtypeStruct((n_p, m), jnp.float32),
        grid=(n_p // rt,),
        in_specs=in_specs,
        out_specs=pl.BlockSpec((rt, m), lambda i: (i, 0)),
        compiler_params=PARAMS_ROWS,
    )(*args)
    return out[:n]


def _atom_update_kernel(nei_ref, ma_ref, o_ref):
    g = nei_ref[...]                               # (max_nb, rt, Hp)
    o_ref[...] = ma_ref[...] + jnp.sum(g, axis=0) * jnp.max(g, axis=0)


def atom_update(nei, msg_atom):
    """msg_atom + sum(nb)*max(nb).  nei: (max_nb, N, Hp), msg_atom: (N, Hp)."""
    nb, n, h = nei.shape
    rt = _row_tile(n)
    n_p = _round_up(n, rt)
    nei_p = _pad_axis(nei, n_p, axis=1)
    ma_p = _pad_axis(msg_atom, n_p, axis=0)
    out = pl.pallas_call(
        _atom_update_kernel,
        out_shape=jax.ShapeDtypeStruct((n_p, h), jnp.float32),
        grid=(n_p // rt,),
        in_specs=[pl.BlockSpec((nb, rt, h), lambda i: (0, i, 0)),
                  pl.BlockSpec((rt, h), lambda i: (i, 0))],
        out_specs=pl.BlockSpec((rt, h), lambda i: (i, 0)),
        compiler_params=PARAMS_ROWS,
    )(nei_p, ma_p)
    return out[:n]


def _bond_update_kernel(ma_ref, rev_ref, inp_ref, w_ref, o_ref):
    d = ma_ref[...] - rev_ref[...]
    y = jnp.dot(d, w_ref[...], preferred_element_type=jnp.float32)
    o_ref[...] = jnp.maximum(inp_ref[...] + y, 0.0)


def bond_update(ma_gathered, rev_message, input_bond, w_h):
    """relu(input_bond + (msg_atom[b2a] - rev_message) @ W_h), fused, row-tiled."""
    n, h = ma_gathered.shape
    rt = _row_tile(n)
    n_p = _round_up(n, rt)
    out = pl.pallas_call(
        _bond_update_kernel,
        out_shape=jax.ShapeDtypeStruct((n_p, h), jnp.float32),
        grid=(n_p // rt,),
        in_specs=[pl.BlockSpec((rt, h), lambda i: (i, 0)),
                  pl.BlockSpec((rt, h), lambda i: (i, 0)),
                  pl.BlockSpec((rt, h), lambda i: (i, 0)),
                  pl.BlockSpec((h, h), lambda i: (0, 0))],
        out_specs=pl.BlockSpec((rt, h), lambda i: (i, 0)),
        compiler_params=PARAMS_ROWS,
    )(_pad_axis(ma_gathered, n_p), _pad_axis(rev_message, n_p),
      _pad_axis(input_bond, n_p), w_h)
    return out[:n]


def _final_lr_kernel(nei_ref, ma_ref, ia_ref, w1_ref, w2_ref, w3_ref, bias_ref,
                     node_ref, msg_ref):
    g = nei_ref[...]
    agg = jnp.sum(g, axis=0) * jnp.max(g, axis=0)
    y = jnp.dot(agg, w1_ref[...], preferred_element_type=jnp.float32)
    y = y + jnp.dot(ma_ref[...], w2_ref[...], preferred_element_type=jnp.float32)
    y = y + jnp.dot(ia_ref[...], w3_ref[...], preferred_element_type=jnp.float32)
    node_ref[...] = y
    msg_ref[...] = jnp.maximum(y + bias_ref[...], 0.0)


def final_agg_lr(nei, msg_atom, input_atom, w1, w2, w3, gru_bias):
    """Fused: sum*max aggregation, lr (split into 3 accumulated matmuls),
    and BatchGRU's relu(node + bias).  Returns (node, message)."""
    nb, n, h = nei.shape
    rt = _row_tile(n)
    n_p = _round_up(n, rt)
    node, msg = pl.pallas_call(
        _final_lr_kernel,
        out_shape=(jax.ShapeDtypeStruct((n_p, h), jnp.float32),
                   jax.ShapeDtypeStruct((n_p, h), jnp.float32)),
        grid=(n_p // rt,),
        in_specs=[pl.BlockSpec((nb, rt, h), lambda i: (0, i, 0)),
                  pl.BlockSpec((rt, h), lambda i: (i, 0)),
                  pl.BlockSpec((rt, h), lambda i: (i, 0)),
                  pl.BlockSpec((h, h), lambda i: (0, 0)),
                  pl.BlockSpec((h, h), lambda i: (0, 0)),
                  pl.BlockSpec((h, h), lambda i: (0, 0)),
                  pl.BlockSpec((1, h), lambda i: (0, 0))],
        out_specs=(pl.BlockSpec((rt, h), lambda i: (i, 0)),
                   pl.BlockSpec((rt, h), lambda i: (i, 0))),
        compiler_params=PARAMS_ROWS,
    )(_pad_axis(nei, n_p, axis=1), _pad_axis(msg_atom, n_p),
      _pad_axis(input_atom, n_p), w1, w2, w3, gru_bias)
    return node[:n], msg[:n]


def _gru_step(gi_ref, whh_ref, bhh_ref, h_scr, o_ref):
    # gi_ref block: (3, 1, B, Hp) gate-major; whh_ref: (3, Hp, Hp); bhh_ref: (3, 1, Hp)
    h = h_scr[...]
    gh_r = jnp.dot(h, whh_ref[0], preferred_element_type=jnp.float32) + bhh_ref[0]
    gh_z = jnp.dot(h, whh_ref[1], preferred_element_type=jnp.float32) + bhh_ref[1]
    gh_n = jnp.dot(h, whh_ref[2], preferred_element_type=jnp.float32) + bhh_ref[2]
    r = jax.nn.sigmoid(gi_ref[0, 0] + gh_r)
    z = jax.nn.sigmoid(gi_ref[1, 0] + gh_z)
    n = jnp.tanh(gi_ref[2, 0] + r * gh_n)
    h_new = (1.0 - z) * n + z * h
    h_scr[...] = h_new
    o_ref[0] = h_new


def _bigru_kernel(gif_ref, gir_ref, h0_ref,
                  whf_ref, bhf_ref, whr_ref, bhr_ref,
                  of_ref, or_ref, hf_scr, hr_scr):
    @pl.when(pl.program_id(0) == 0)
    def _():
        hf_scr[...] = h0_ref[...]
        hr_scr[...] = h0_ref[...]

    _gru_step(gif_ref, whf_ref, bhf_ref, hf_scr, of_ref)   # forward: time t
    _gru_step(gir_ref, whr_ref, bhr_ref, hr_scr, or_ref)   # reverse: time T-1-t


def bigru(gi_f, gi_r, h0, whh_f, bhh_f, whh_r, bhh_r):
    """Streamed bidirectional GRU.  gi_*: (3, T, B, Hp) precomputed input gates
    (x @ W_ih + b_ih); only the recurrent h @ W_hh matmul runs per step."""
    _, T, B, H = gi_f.shape
    out_f, out_r = pl.pallas_call(
        _bigru_kernel,
        out_shape=(jax.ShapeDtypeStruct((T, B, H), jnp.float32),
                   jax.ShapeDtypeStruct((T, B, H), jnp.float32)),
        grid=(T,),
        in_specs=[
            pl.BlockSpec((3, 1, B, H), lambda t: (0, t, 0, 0)),
            pl.BlockSpec((3, 1, B, H), lambda t: (0, T - 1 - t, 0, 0)),
            pl.BlockSpec((B, H), lambda t: (0, 0)),
            pl.BlockSpec((3, H, H), lambda t: (0, 0, 0)),
            pl.BlockSpec((3, 1, H), lambda t: (0, 0, 0)),
            pl.BlockSpec((3, H, H), lambda t: (0, 0, 0)),
            pl.BlockSpec((3, 1, H), lambda t: (0, 0, 0)),
        ],
        out_specs=(pl.BlockSpec((1, B, H), lambda t: (t, 0, 0)),
                   pl.BlockSpec((1, B, H), lambda t: (T - 1 - t, 0, 0))),
        scratch_shapes=[pltpu.VMEM((B, H), jnp.float32),
                        pltpu.VMEM((B, H), jnp.float32)],
        compiler_params=PARAMS_SEQ,
    )(gi_f, gi_r, h0, whh_f, bhh_f, whh_r, bhh_r)
    return out_f, out_r


# ------------------------------- parameters --------------------------------

def init_params(key, atom_fdim, bond_fdim, H, depth):
    Hp = _round_up(H, LANE)
    Fa = _round_up(atom_fdim, LANE)
    Fb = _round_up(bond_fdim, LANE)
    keys = list(jax.random.split(key, 64))
    kit = iter(keys)

    def u(shape, bound):
        return jax.random.uniform(next(kit), shape, jnp.float32, -bound, bound)

    def padm(m, rows, cols):
        return jnp.zeros((rows, cols), jnp.float32).at[:m.shape[0], :m.shape[1]].set(m)

    p = {'H': H, 'Hp': Hp, 'Fa': Fa, 'Fb': Fb, 'depth': depth}
    p['W_i_atom'] = padm(u((atom_fdim, H), 1.0 / math.sqrt(atom_fdim)), Fa, Hp)
    p['W_i_bond'] = padm(u((bond_fdim, H), 1.0 / math.sqrt(bond_fdim)), Fb, Hp)
    p['W_h'] = [padm(u((H, H), 1.0 / math.sqrt(H)), Hp, Hp) for _ in range(depth - 1)]

    blr = 1.0 / math.sqrt(3 * H)            # lr: (3H -> H), split into 3 pieces
    p['lr1'] = padm(u((H, H), blr), Hp, Hp)
    p['lr2'] = padm(u((H, H), blr), Hp, Hp)
    p['lr3'] = padm(u((H, H), blr), Hp, Hp)

    bwo = 1.0 / math.sqrt(2 * H)            # W_o: (2H -> H), with bias
    wo = jnp.zeros((2 * Hp, Hp), jnp.float32)
    wo = wo.at[:H, :H].set(u((H, H), bwo))
    wo = wo.at[Hp:Hp + H, :H].set(u((H, H), bwo))
    p['W_o'] = wo
    p['W_o_b'] = padm(u((1, H), bwo), 1, Hp)

    bg = 1.0 / math.sqrt(H)
    p['gru_bias'] = padm(u((1, H), bg), 1, Hp)
    for d in ('f', 'r'):
        wih = jnp.zeros((Hp, 3 * Hp), jnp.float32)       # x @ W_ih^T, gate blocks
        bih = jnp.zeros((1, 3 * Hp), jnp.float32)
        whh = jnp.zeros((3, Hp, Hp), jnp.float32)        # gate-major recurrent weights
        bhh = jnp.zeros((3, 1, Hp), jnp.float32)
        for g in range(3):                               # gate order r, z, n
            wih = wih.at[:H, g * Hp:g * Hp + H].set(u((H, H), bg))
            bih = bih.at[:, g * Hp:g * Hp + H].set(u((1, H), bg))
            whh = whh.at[g, :H, :H].set(u((H, H), bg))
            bhh = bhh.at[g, :, :H].set(u((1, H), bg))
        p[f'gru_wih_{d}'] = wih
        p[f'gru_bih_{d}'] = bih
        p[f'gru_whh_{d}'] = whh
        p[f'gru_bhh_{d}'] = bhh
    return p


# ------------------------------- forward pass ------------------------------

def mpn_encoder_forward(params, f_atoms, f_bonds, a2b, b2a, b2revb, a_scope, depth):
    H, Hp, Fa, Fb = params['H'], params['Hp'], params['Fa'], params['Fb']
    n_atoms, n_bonds = f_atoms.shape[0], f_bonds.shape[0]
    max_nb = a2b.shape[1]

    # --- pad row counts to multiples of 8 and feature dims to lane multiples ---
    Ap = _round_up(n_atoms, 8)
    Bn = _round_up(n_bonds, 8)
    f_atoms_p = jnp.zeros((Ap, Fa), jnp.float32).at[:n_atoms, :f_atoms.shape[1]].set(f_atoms)
    f_bonds_p = jnp.zeros((Bn, Fb), jnp.float32).at[:n_bonds, :f_bonds.shape[1]].set(f_bonds)
    a2b_p = jnp.zeros((Ap, max_nb), jnp.int32).at[:n_atoms].set(a2b)
    b2a_p = jnp.zeros((Bn,), jnp.int32).at[:n_bonds].set(b2a)
    b2revb_p = jnp.zeros((Bn,), jnp.int32).at[:n_bonds].set(b2revb)

    input_atom = linear(f_atoms_p, params['W_i_atom'], relu=True)      # (Ap, Hp)
    input_bond = linear(f_bonds_p, params['W_i_bond'], relu=True)      # (Bn, Hp)
    message_atom = input_atom
    message_bond = input_bond

    a2b_t = a2b_p.T                                                    # (max_nb, Ap)
    for d in range(depth - 1):
        nei = message_bond[a2b_t]                                      # (max_nb, Ap, Hp)
        message_atom = atom_update(nei, message_atom)
        ma_g = message_atom[b2a_p]
        rev = message_bond[b2revb_p]
        message_bond = bond_update(ma_g, rev, input_bond, params['W_h'][d])
        # dropout p=0 -> identity

    nei = message_bond[a2b_t]
    node, message = final_agg_lr(nei, message_atom, input_atom,
                                 params['lr1'], params['lr2'], params['lr3'],
                                 params['gru_bias'])
    # node == hidden (lr output), message == relu(node + gru_bias)

    # ----------------------------- BatchGRU -------------------------------
    starts = np.array([s for s, _ in a_scope], dtype=np.int32)
    sizes = np.array([sz for _, sz in a_scope], dtype=np.int32)
    n_mols = len(a_scope)
    T = int(sizes.max())
    Bp = _round_up(n_mols, 8)

    # Static (numpy) index/mask tables -> one vectorized gather each.
    t_range = np.arange(T)[:, None]
    idx = np.zeros((T, Bp), dtype=np.int32)
    valid = np.zeros((T, Bp), dtype=bool)
    idx[:, :n_mols] = starts[None, :] + t_range
    valid[:, :n_mols] = t_range < sizes[None, :]
    idx = np.where(valid, idx, 0)
    idx_j, valid_j = jnp.asarray(idx), jnp.asarray(valid)

    x_tbh = jnp.where(valid_j[:, :, None], message[idx_j], 0.0)        # (T, Bp, Hp)
    hid_g = jnp.where(valid_j[:, :, None], node[idx_j], -jnp.inf)
    h0 = jnp.max(hid_g, axis=0)                                        # (Bp, Hp)
    mol_valid = jnp.asarray(np.arange(Bp) < n_mols)
    h0 = jnp.where(mol_valid[:, None], h0, 0.0)

    # Hoisted input-gate matmuls (one big matmul per direction).
    x_flat = x_tbh.reshape(T * Bp, Hp)
    gi_f = linear(x_flat, params['gru_wih_f'], params['gru_bih_f'])    # (T*Bp, 3Hp)
    gi_r = linear(x_flat, params['gru_wih_r'], params['gru_bih_r'])
    gi_f = jnp.transpose(gi_f.reshape(T, Bp, 3, Hp), (2, 0, 1, 3))     # (3, T, Bp, Hp)
    gi_r = jnp.transpose(gi_r.reshape(T, Bp, 3, Hp), (2, 0, 1, 3))

    out_f, out_r = bigru(gi_f, gi_r, h0,
                         params['gru_whh_f'], params['gru_bhh_f'],
                         params['gru_whh_r'], params['gru_bhh_r'])
    out2 = jnp.concatenate([out_f, out_r], axis=-1)                    # (T, Bp, 2Hp)

    # Vectorized unpadding (static index tables).
    t_ids = np.concatenate([np.arange(sz) for sz in sizes]).astype(np.int32)
    m_ids = np.concatenate([np.full(sz, i) for i, sz in enumerate(sizes)]).astype(np.int32)
    unpadded = out2[jnp.asarray(t_ids), jnp.asarray(m_ids)]            # (n_valid, 2Hp)

    first = jnp.concatenate([message[0:1], message[0:1]], axis=1)      # (1, 2Hp)
    full = jnp.concatenate([first, unpadded], axis=0)                  # (1+n_valid, 2Hp)

    atom_hiddens = linear(full, params['W_o'], params['W_o_b'], relu=True)
    n_valid = int(sizes.sum())
    return atom_hiddens[1:1 + n_valid, :H]


# --------------------------------- driver ----------------------------------

if __name__ == "__main__":
    atom_fdim, bond_fdim, hidden_size, depth = 16, 24, 32, 3
    key = jax.random.PRNGKey(0)
    kp, ka, kb = jax.random.split(key, 3)
    params = init_params(kp, atom_fdim, bond_fdim, hidden_size, depth)

    # Tiny synthetic batched molecular graph (index 0 = padding atom / bond).
    # mol 1: atoms 1-3, bonds 1-4 (directed); mol 2: atoms 4-7, bonds 5-10.
    n_atoms, n_bonds, max_nb = 8, 11, 3
    f_atoms = jax.random.normal(ka, (n_atoms, atom_fdim), jnp.float32).at[0].set(0.0)
    f_bonds = jax.random.normal(kb, (n_bonds, bond_fdim), jnp.float32).at[0].set(0.0)

    a2b = jnp.array([[0, 0, 0],
                     [2, 0, 0],
                     [1, 4, 0],
                     [3, 0, 0],
                     [6, 0, 0],
                     [5, 8, 0],
                     [7, 10, 0],
                     [9, 0, 0]], dtype=jnp.int32)
    b2a = jnp.array([0, 1, 2, 2, 3, 4, 5, 5, 6, 6, 7], dtype=jnp.int32)
    b2revb = jnp.array([0, 2, 1, 4, 3, 6, 5, 8, 7, 10, 9], dtype=jnp.int32)
    a_scope = [(1, 3), (4, 4)]

    out = mpn_encoder_forward(params, f_atoms, f_bonds, a2b, b2a, b2revb, a_scope, depth)
    out = jax.block_until_ready(out)
    assert out.shape == (n_atoms - 1, hidden_size), out.shape
    assert bool(jnp.all(jnp.isfinite(out)))
    print("KERNEL_OK")
</pallas_src>

<mosaic_0001>
module attributes {stable_mosaic.version = 11 : i64} {
  func.func @_linear_kernel(%arg0: i32, %arg1: memref<8x128xf32, #tpu.memory_space<vmem>>, %arg2: memref<128x128xf32, #tpu.memory_space<vmem>>, %arg3: memref<8x128xf32, #tpu.memory_space<vmem>>) attributes {dimension_semantics = [#tpu.dimension_semantics<parallel>], iteration_bounds = array<i64: 1>, scalar_prefetch = 0 : i64, scratch_operands = 0 : i64, tpu.core_type = #tpu.core_type<tc>, window_params = [{transform_indices = @transform_0, window_bounds = array<i64: 8, 128>}, {pipeline_mode = #tpu.pipeline_mode<synchronous>, transform_indices = @transform_1, window_bounds = array<i64: 128, 128>}, {transform_indices = @transform_2, window_bounds = array<i64: 8, 128>}]} {
    %c0 = arith.constant 0 : index
    %c0_0 = arith.constant 0 : index
    %0 = vector.load %arg1[%c0, %c0_0] : memref<8x128xf32, #tpu.memory_space<vmem>>, vector<8x128xf32>
    %c0_1 = arith.constant 0 : index
    %c0_2 = arith.constant 0 : index
    %1 = vector.load %arg2[%c0_1, %c0_2] : memref<128x128xf32, #tpu.memory_space<vmem>>, vector<128x128xf32>
    %cst = arith.constant dense<0.000000e+00> : vector<8x128xf32>
    %2 = tpu.matmul %0, %1, %cst {dimension_numbers = #tpu.dot_dimension_numbers<[1], [0], [0], [1], [0, 0, 1, 1], [], []>} : vector<8x128xf32>, vector<128x128xf32>, vector<8x128xf32> -> vector<8x128xf32>
    %cst_3 = arith.constant 0.000000e+00 : f32
    %3 = vector.broadcast %cst_3 : f32 to vector<8x128xf32>
    %4 = arith.maximumf %2, %3 : vector<8x128xf32>
    %c0_4 = arith.constant 0 : index
    %c0_5 = arith.constant 0 : index
    %5 = vector.load %arg3[%c0_4, %c0_5] : memref<8x128xf32, #tpu.memory_space<vmem>>, vector<8x128xf32>
    tpu.vector_store %arg3[%c0_4, %c0_5], %4 {strides = array<i32>} : memref<8x128xf32, #tpu.memory_space<vmem>>, vector<8x128xf32>,
    return
  }
  func.func @transform_0(%arg0: i32) -> (i32, i32) {
    %c0_i32 = arith.constant 0 : i32
    %c0_i32_0 = arith.constant 0 : i32
    return %arg0, %c0_i32 : i32, i32
  }
  func.func @transform_1(%arg0: i32) -> (i32, i32) {
    %c0_i32 = arith.constant 0 : i32
    %c0_i32_0 = arith.constant 0 : i32
    %c0_i32_1 = arith.constant 0 : i32
    return %c0_i32, %c0_i32_0 : i32, i32
  }
  func.func @transform_2(%arg0: i32) -> (i32, i32) {
    %c0_i32 = arith.constant 0 : i32
    %c0_i32_0 = arith.constant 0 : i32
    return %arg0, %c0_i32 : i32, i32
  }
}

</mosaic_0001>

<bundles_post_ra>
// kernel: tpu_custom_call.1
= control target key start
LH: loop header
LB: loop body
LE: loop exit
PB: predicated region body
PF: predicated region fallthrough
CT: control target
= control target key end

     0   :  { %7 = vsyncpa [#allocation3], 0  ;;  %s211_s0 = inlined_call_operand.hbm [shape: f32[8,128], index: 0, kind: input, shape index: {}]   ;;  %s212_s1 = inlined_call_operand.hbm [shape: f32[128,128], index: 1, kind: input, shape index: {}]   ;;  %s213_s2 = inlined_call_operand.hbm [shape: f32[8,128], index: 2, kind: output, shape index: {}]  }
   0x1   :  { %8 = vsyncpa [#allocation6], 0 }
   0x2   :  { %9 = vsyncpa [#allocation4], 0  ;;  %s15_s11 = sshll.u32 %s211_s0, 4  ;;  %s182_s12 = smov [#allocation2]   ;;  %s16_s11 = int_to_ptr.hbm [resolvable:$true] %s15_s11 }
   0x3   :  { %s17_s13 = sshll.u32 %s182_s12, 4  ;;  %s25_s16 = sshll.u32 %s212_s1, 4  ;;  %s18_s13 = int_to_ptr.vmem [resolvable:$true] %s17_s13  ;;  %s26_s16 = int_to_ptr.hbm [resolvable:$true] %s25_s16 }
   0x4   :  { %20 = dma.hbm_to_vmem [thread:$0]  %s16_s11, 128, %s18_s13, [#allocation3]  }
   0x5   :  { %s183_s17 = smov [#allocation5]   ;;  %s184_s19 = smov 128  }
   0x6   :  { %s27_s18 = sshll.u32 %s183_s17, 4  ;;  %s185_s20 = smov 8   ;;  %s28_s18 = int_to_ptr.vmem [resolvable:$true] %s27_s18 }
   0x7   :  { %33 = dma.hbm_to_vmem [thread:$0]  %s26_s16, 2048, %s28_s18, [#allocation6], %s184_s19, %s184_s19, %s185_s20  }
   0x8   :  { %176 = dma.done.wait [#allocation3], 128  }
   0x9   :  { %177 = vsyncadd [#allocation3], 4294967168 }
   0xa   :  { %178 = dma.done.wait [#allocation6], 2048  }
   0xb   :  { %179 = vsyncadd [#allocation6], 4294965248  ;;  %v58_v0 = vld [vmem:[#allocation5 + $0x78] sm:$0xff]  ;;  %v57_v1 = vld [vmem:[#allocation5 + $0x70] sm:$0xff]  ;;  %s186_s0 = smov [#allocation7]   ;;  %s88_s23 = sshll.u32 %s213_s2, 4  ;;  %s89_s23 = int_to_ptr.hbm [resolvable:$true] %s88_s23 }
   0xc   :  { %59 = vmatpush.msra.mxu0 %v58_v0  ;;  %v56_v2 = vld [vmem:[#allocation5 + $0x68] sm:$0xff]  ;;  %v55_v3 = vld [vmem:[#allocation5 + $0x60] sm:$0xff]  ;;  %v54_v4 = vld [vmem:[#allocation5 + $0x58] sm:$0xff]  ;;  %s86_s1 = sshll.u32 %s186_s0, 4  ;;  %s87_s1 = int_to_ptr.vmem [resolvable:$true] %s86_s1 }
   0xd   :  { %v53_v5 = vld [vmem:[#allocation5 + $0x50] sm:$0xff]  ;;  %v52_v6 = vld [vmem:[#allocation5 + $0x48] sm:$0xff]  ;;  %v51_v7 = vld [vmem:[#allocation5 + $0x40] sm:$0xff] }
   0xe   :  { %60 = vmatpush.msra.mxu0 %v57_v1  ;;  %v50_v8 = vld [vmem:[#allocation5 + $0x38] sm:$0xff]  ;;  %v49_v9 = vld [vmem:[#allocation5 + $0x30] sm:$0xff]  ;;  %v48_v10 = vld [vmem:[#allocation5 + $0x28] sm:$0xff] }
   0xf   :  { %v47_v11 = vld [vmem:[#allocation5 + $0x20] sm:$0xff]  ;;  %v46_v12 = vld [vmem:[#allocation5 + $0x18] sm:$0xff]  ;;  %v45_v13 = vld [vmem:[#allocation5 + $0x10] sm:$0xff] }
  0x10   :  { %61 = vmatpush.msra.mxu0 %v56_v2  ;;  %v44_v14 = vld [vmem:[#allocation5 + $0x8] sm:$0xff]  ;;  %v43_v15 = vld [vmem:[#allocation5] sm:$0xff]  ;;  %v42_v16 = vld [vmem:[#allocation2] sm:$0xff] }
  0x12   :  { %62 = vmatpush.msra.mxu0 %v55_v3 }
  0x14   :  { %63 = vmatpush.msra.mxu0 %v54_v4 }
  0x16   :  { %64 = vmatpush.msra.mxu0 %v53_v5 }
  0x18   :  { %65 = vmatpush.msra.mxu0 %v52_v6 }
  0x1a   :  { %66 = vmatpush.msra.mxu0 %v51_v7 }
  0x1c   :  { %67 = vmatpush.msra.mxu0 %v50_v8 }
  0x1e   :  { %68 = vmatpush.msra.mxu0 %v49_v9 }
  0x20   :  { %69 = vmatpush.msra.mxu0 %v48_v10 }
  0x22   :  { %70 = vmatpush.msra.mxu0 %v47_v11 }
  0x24   :  { %71 = vmatpush.msra.mxu0 %v46_v12 }
  0x26   :  { %72 = vmatpush.msra.mxu0 %v45_v13 }
  0x28   :  { %73 = vmatpush.msra.mxu0 %v44_v14 }
  0x2a   :  { %74 = vmatpush.msra.mxu0 %v43_v15 }
  0x2b   :  { %75 = vmatmul.f32.vlgmr.msra.gmra.mxu0 %v42_v16 }
  0xa8   :  { %v76_v17 = vpop.f32.mrf.mxu0 }
  0xa9   :  { %v79_v18 = vmax.f32 %v76_v17, 0.0 }
  0xab   :  { %80 = vst [vmem:[#allocation7] sm:$0xff] %v79_v18 }
  0xac   :  { %91 = dma.vmem_to_hbm [thread:$0]  %s87_s1, 128, %s89_s23, [#allocation4]  }
  0xad   :  { %180 = dma.done.wait [#allocation4], 128  }
  0xae   :  { %181 = vsyncadd [#allocation4], 4294967168 }
  0xaf   :  { %96 = vsyncpa [#allocation3], 1 }
  0xb0   :  { %97 = vsyncpa [#allocation6], 1 }
  0xb1   :  { %98 = vsyncpa [#allocation4], 1 }

</bundles_post_ra>
